<compile_context>
chip_gen: v7x
topology: tpu7x:2x2x1
jax: 0.10.0
libtpu: 0.0.40
codegen_flags: <defaults>
</compile_context>

<pallas_src>
import functools

import jax
import jax.numpy as jnp
from jax import lax
from jax.experimental import pallas as pl
from jax.experimental.pallas import tpu as pltpu

BN_EPS = 1e-5


def _sa_kernel(x_ref, wqv_ref, wt_ref, b_ref, out_ref, *,
               block_b, n, c4p, dot_dtype, approx_recip):
    # Lane-dense slab of block_b batch elements: (C, block_b * N).
    parts = [x_ref[b] for b in range(block_b)]
    slab = parts[0] if block_b == 1 else jnp.concatenate(parts, axis=-1)
    slab_mm = slab.astype(dot_dtype)

    wqv = wqv_ref[...]              # (C4p + C, C)  stacked q|v weights, dot_dtype
    wt = wt_ref[...]                # (C, C)        BN scale folded in, dot_dtype
    bv = b_ref[:, 0:1]              # (C, 1) f32    v_conv bias
    bt = b_ref[:, 1:2]              # (C, 1) f32    BN-folded trans_conv bias

    # q and v channel projections for all block_b elements in a single matmul.
    qv_all = jnp.dot(wqv, slab_mm, preferred_element_type=jnp.float32)  # (C4p+C, bB*N)
    q_all = qv_all[:c4p, :]                  # zero-padded q rows (pads contribute 0)
    v_all = qv_all[c4p:, :] + bv             # (C, bB*N)

    xr_parts = []
    for b in range(block_b):
        sl = slice(b * n, (b + 1) * n)
        q = q_all[:, sl]                     # (C4p, N) f32
        xv = v_all[:, sl]                    # (C,   N) f32

        # energy[i, j] = sum_c q[c, i] * q[c, j]  (contract channel axis,
        # no explicit transpose of q).
        qd = q.astype(dot_dtype)
        energy = lax.dot_general(qd, qd, (((0,), (0,)), ((), ())),
                                 preferred_element_type=jnp.float32)    # (N, N)

        # Softmax over last dim; divisions replaced by reciprocals + scaling.
        mmax = jnp.max(energy, axis=-1, keepdims=True)                  # (N, 1)
        e = jnp.exp(energy - mmax)                                      # (N, N) f32
        rowsum = jnp.sum(e, axis=-1, keepdims=True)                     # (N, 1)
        r_t = pl.reciprocal(rowsum.T, approx=approx_recip)              # (1, N)
        # torch's attention.sum(dim=1) of the softmax == r^T @ e (thin matvec)
        colsum = jnp.dot(r_t, e, preferred_element_type=jnp.float32)    # (1, N)
        cinv = pl.reciprocal(colsum + 1e-9, approx=approx_recip)        # (1, N)

        # x_r = x_v @ attn' == ((x_v * r) @ e) * cinv  -- zero (N, N) divides.
        xv_s = (xv * r_t).astype(dot_dtype)                             # (C, N)
        x_r = jnp.dot(xv_s, e.astype(dot_dtype),
                      preferred_element_type=jnp.float32) * cinv        # (C, N)
        xr_parts.append(x_r)

    xr_slab = xr_parts[0] if block_b == 1 else jnp.concatenate(xr_parts, axis=-1)

    # trans_conv with eval-mode BN folded in, then ReLU + residual.
    t = jnp.dot(wt, (slab - xr_slab).astype(dot_dtype),
                preferred_element_type=jnp.float32) + bt
    y = slab + jnp.maximum(t, 0.0)                                      # (C, bB*N)

    for b in range(block_b):
        out_ref[b] = y[:, b * n:(b + 1) * n].astype(out_ref.dtype)


def _fold_bn(params):
    """Fold eval-mode BatchNorm into trans_conv weight/bias (exact algebra)."""
    s = params["gamma"] * lax.rsqrt(params["var"] + BN_EPS)        # (C, 1)
    wt_f = s * params["wt"]                                        # row-scaled (C, C)
    bt_f = s * (params["bt"] - params["mean"]) + params["beta"]    # (C, 1)
    return wt_f, bt_f


def _vmem_estimate_bytes(block_b, C, N):
    C4p = max(((C // 4 + 7) // 8) * 8, 8)
    f32 = 4
    io = 4 * block_b * C * N * f32             # double-buffered x + out blocks
    slabs = 3 * block_b * C * N * f32          # slab, xr_slab, t/y temporaries
    proj = (C4p + C) * block_b * N * f32       # stacked q|v projection result
    attn = 3 * N * N * f32                     # energy, e (+ cast headroom)
    weights = 2 * ((C4p + C) * C + C * C + 2 * C) * f32
    return io + slabs + proj + attn + weights


def _pick_block_batch(B, C, N, budget_bytes=24 << 20):
    divisors = [d for d in range(1, B + 1) if B % d == 0]
    if B >= 2:  # keep >=2 grid steps when possible so both v7x TCs get work
        divisors = [d for d in divisors if B // d >= 2] or [1]
    best = 1
    for d in divisors:
        if _vmem_estimate_bytes(d, C, N) <= budget_bytes:
            best = max(best, d)
    return best


def sa_layer(x, params, *, fast=True, block_b=None):
    """x: (B, C, N) float32.  params: see init_params.

    fast=True  -> bf16 MXU operands + approx EUP reciprocals (v6e/v7x fast path).
    fast=False -> f32 matmuls + exact reciprocals (tight vs. the reference).
    """
    B, C, N = x.shape
    C4 = C // 4
    C4p = max(((C4 + 7) // 8) * 8, 8)        # pad q rows to the f32 sublane tile
    if block_b is None:
        block_b = _pick_block_batch(B, C, N)
    assert B % block_b == 0

    wt_f, bt_f = _fold_bn(params)
    # Stack (zero-padded) q weight on top of v weight: one projection matmul.
    wq_pad = jnp.zeros((C4p, C), jnp.float32).at[:C4].set(params["wq"])
    wqv = jnp.concatenate([wq_pad, params["wv"]], axis=0)            # (C4p + C, C)
    biases = jnp.concatenate([params["bv"], bt_f], axis=1)           # (C, 2)

    dot_dtype = jnp.bfloat16 if fast else jnp.float32
    wqv_c = wqv.astype(dot_dtype)
    wt_c = wt_f.astype(dot_dtype)

    kernel = functools.partial(_sa_kernel, block_b=block_b, n=N, c4p=C4p,
                               dot_dtype=dot_dtype, approx_recip=fast)

    full = lambda shape: pl.BlockSpec(shape, lambda i: tuple(0 for _ in shape))

    flops_per_b = (2 * N * N * (C4p + C + 1)          # energy + x_r + colsum
                   + 2 * C * N * (C4p + C)            # stacked projection
                   + 2 * C * C * N)                   # trans_conv
    cost = pl.CostEstimate(
        flops=int(B * flops_per_b),
        transcendentals=int(B * (N * N + 2 * N)),
        bytes_accessed=int(2 * B * C * N * 4
                           + ((C4p + C) * C + C * C + 2 * C) * 4),
    )

    vmem_limit = int(min(max(2 * _vmem_estimate_bytes(block_b, C, N), 32 << 20),
                         96 << 20))

    return pl.pallas_call(
        kernel,
        out_shape=jax.ShapeDtypeStruct((B, C, N), jnp.float32),
        grid_spec=pltpu.PrefetchScalarGridSpec(
            num_scalar_prefetch=0,
            grid=(B // block_b,),
            in_specs=[
                pl.BlockSpec((block_b, C, N), lambda i: (i, 0, 0)),  # x
                full((C4p + C, C)),   # stacked [wq_padded ; wv] (dot dtype)
                full((C, C)),         # wt with BN scale folded in (dot dtype)
                full((C, 2)),         # [bv | BN-folded bt] (f32)
            ],
            out_specs=pl.BlockSpec((block_b, C, N), lambda i: (i, 0, 0)),
        ),
        compiler_params=pltpu.CompilerParams(
            dimension_semantics=("parallel",),
            vmem_limit_bytes=vmem_limit),
        cost_estimate=cost,
    )(x, wqv_c, wt_c, biases)


def init_params(key, C):
    C4 = C // 4
    ks = jax.random.split(key, 6)
    scale = 0.1
    return dict(
        wq=scale * jax.random.normal(ks[0], (C4, C), jnp.float32),   # shared q/k weight
        wv=scale * jax.random.normal(ks[1], (C, C), jnp.float32),
        bv=scale * jax.random.normal(ks[2], (C, 1), jnp.float32),
        wt=scale * jax.random.normal(ks[3], (C, C), jnp.float32),
        bt=scale * jax.random.normal(ks[4], (C, 1), jnp.float32),
        gamma=1.0 + 0.1 * jax.random.normal(ks[5], (C, 1), jnp.float32),
        beta=jnp.zeros((C, 1), jnp.float32) + 0.05,
        mean=jnp.zeros((C, 1), jnp.float32),
        var=jnp.ones((C, 1), jnp.float32),
    )


def sa_layer_ref(x, p):
    """Pure-JAX reference mirroring the PyTorch forward (eval-mode BN)."""
    q = jnp.einsum("oc,bcn->bon", p["wq"], x)                 # (B, C4, N)
    energy = jnp.einsum("bcn,bcm->bnm", q, q)                 # (B, N, N)
    attn = jax.nn.softmax(energy, axis=-1)
    attn = attn / (1e-9 + jnp.sum(attn, axis=1, keepdims=True))
    xv = jnp.einsum("oc,bcn->bon", p["wv"], x) + p["bv"][None]
    x_r = jnp.einsum("bcn,bnm->bcm", xv, attn)
    t = jnp.einsum("oc,bcn->bon", p["wt"], x - x_r) + p["bt"][None]
    t = (t - p["mean"][None]) / jnp.sqrt(p["var"][None] + BN_EPS)
    t = t * p["gamma"][None] + p["beta"][None]
    return x + jnp.maximum(t, 0.0)


if __name__ == "__main__":
    B, C, N = 4, 32, 128
    key = jax.random.PRNGKey(0)
    kx, kp = jax.random.split(key)
    x = jax.random.normal(kx, (B, C, N), jnp.float32)
    params = init_params(kp, C)

    ref = sa_layer_ref(x, params)

    # Precise path (f32 MXU operands + exact reciprocals): tight check.
    out_f32 = jax.block_until_ready(sa_layer(x, params, fast=False))
    assert out_f32.shape == (B, C, N)
    err = float(jnp.max(jnp.abs(out_f32 - ref)))
    assert jnp.allclose(out_f32, ref, atol=1e-4, rtol=1e-4), err

    # Fast path (bf16 MXU operands + approx reciprocals): bf16-level tolerance.
    out_fast = jax.block_until_ready(sa_layer(x, params, fast=True))
    err_fast = float(jnp.max(jnp.abs(out_fast - ref)))
    assert jnp.allclose(out_fast, ref, atol=5e-2, rtol=5e-2), err_fast

    print("KERNEL_OK")
</pallas_src>

<mosaic_0001>
module attributes {stable_mosaic.version = 11 : i64} {
  func.func @_sa_kernel(%arg0: i32, %arg1: memref<2x32x128xf32, #tpu.memory_space<vmem>>, %arg2: memref<40x32xf32, #tpu.memory_space<vmem>>, %arg3: memref<32x32xf32, #tpu.memory_space<vmem>>, %arg4: memref<32x2xf32, #tpu.memory_space<vmem>>, %arg5: memref<2x32x128xf32, #tpu.memory_space<vmem>>) attributes {dimension_semantics = [#tpu.dimension_semantics<parallel>], iteration_bounds = array<i64: 2>, scalar_prefetch = 0 : i64, scratch_operands = 0 : i64, tpu.core_type = #tpu.core_type<tc>, window_params = [{transform_indices = @transform_0, window_bounds = array<i64: 2, 32, 128>}, {pipeline_mode = #tpu.pipeline_mode<synchronous>, transform_indices = @transform_1, window_bounds = array<i64: 40, 32>}, {pipeline_mode = #tpu.pipeline_mode<synchronous>, transform_indices = @transform_2, window_bounds = array<i64: 32, 32>}, {pipeline_mode = #tpu.pipeline_mode<synchronous>, transform_indices = @transform_3, window_bounds = array<i64: 32, 2>}, {transform_indices = @transform_4, window_bounds = array<i64: 2, 32, 128>}]} {
    %c0 = arith.constant 0 : index
    %c0_0 = arith.constant 0 : index
    %c0_1 = arith.constant 0 : index
    %0 = vector.load %arg1[%c0, %c0_0, %c0_1] : memref<2x32x128xf32, #tpu.memory_space<vmem>>, vector<1x32x128xf32>
    %1 = vector.shape_cast %0 : vector<1x32x128xf32> to vector<32x128xf32>
    %c1 = arith.constant 1 : index
    %c0_2 = arith.constant 0 : index
    %c0_3 = arith.constant 0 : index
    %2 = vector.load %arg1[%c1, %c0_2, %c0_3] : memref<2x32x128xf32, #tpu.memory_space<vmem>>, vector<1x32x128xf32>
    %3 = vector.shape_cast %2 : vector<1x32x128xf32> to vector<32x128xf32>
    %4 = tpu.concatenate %1, %3 in 1 : vector<32x128xf32>, vector<32x128xf32> -> vector<32x256xf32>
    %c0_4 = arith.constant 0 : index
    %c0_5 = arith.constant 0 : index
    %5 = vector.load %arg2[%c0_4, %c0_5] : memref<40x32xf32, #tpu.memory_space<vmem>>, vector<40x32xf32>
    %c0_6 = arith.constant 0 : index
    %c0_7 = arith.constant 0 : index
    %6 = vector.load %arg3[%c0_6, %c0_7] : memref<32x32xf32, #tpu.memory_space<vmem>>, vector<32x32xf32>
    %c0_8 = arith.constant 0 : index
    %c0_9 = arith.constant 0 : index
    %7 = vector.load %arg4[%c0_8, %c0_9] : memref<32x2xf32, #tpu.memory_space<vmem>>, vector<32x1xf32>
    %c0_10 = arith.constant 0 : index
    %c1_11 = arith.constant 1 : index
    %8 = vector.load %arg4[%c0_10, %c1_11] : memref<32x2xf32, #tpu.memory_space<vmem>>, vector<32x1xf32>
    %cst = arith.constant dense<0.000000e+00> : vector<40x256xf32>
    %9 = tpu.matmul %5, %4, %cst {dimension_numbers = #tpu.dot_dimension_numbers<[1], [0], [0], [1], [0, 0, 1, 1], [], []>} : vector<40x32xf32>, vector<32x256xf32>, vector<40x256xf32> -> vector<40x256xf32>
    %10 = vector.extract_strided_slice %9 {offsets = [0, 0], sizes = [8, 256], strides = [1, 1]} : vector<40x256xf32> to vector<8x256xf32>
    %11 = vector.extract_strided_slice %9 {offsets = [8, 0], sizes = [32, 256], strides = [1, 1]} : vector<40x256xf32> to vector<32x256xf32>
    %12 = vector.broadcast %7 : vector<32x1xf32> to vector<32x256xf32>
    %13 = arith.addf %11, %12 : vector<32x256xf32>
    %14 = vector.extract_strided_slice %10 {offsets = [0, 0], sizes = [8, 128], strides = [1, 1]} : vector<8x256xf32> to vector<8x128xf32>
    %15 = vector.extract_strided_slice %13 {offsets = [0, 0], sizes = [32, 128], strides = [1, 1]} : vector<32x256xf32> to vector<32x128xf32>
    %cst_12 = arith.constant dense<0.000000e+00> : vector<128x128xf32>
    %16 = tpu.matmul %14, %14, %cst_12 {dimension_numbers = #tpu.dot_dimension_numbers<[0], [0], [1], [1], [0, 1, 1, 1], [], []>} : vector<8x128xf32>, vector<8x128xf32>, vector<128x128xf32> -> vector<128x128xf32>
    %cst_13 = arith.constant dense<0xFF800000> : vector<128xf32>
    %17 = vector.multi_reduction <maximumf>, %16, %cst_13 [1] : vector<128x128xf32> to vector<128xf32>
    %18 = vector.shape_cast %17 : vector<128xf32> to vector<128x1xf32>
    %19 = vector.broadcast %18 : vector<128x1xf32> to vector<128x128xf32>
    %20 = arith.subf %16, %19 : vector<128x128xf32>
    %21 = math.exp %20 : vector<128x128xf32>
    %cst_14 = arith.constant dense<0.000000e+00> : vector<128xf32>
    %22 = vector.multi_reduction <add>, %21, %cst_14 [1] : vector<128x128xf32> to vector<128xf32>
    %23 = vector.shape_cast %22 : vector<128xf32> to vector<128x1xf32>
    %24 = tpu.transpose %23, [1, 0] : vector<128x1xf32> -> vector<1x128xf32>
    %25 = tpu.reciprocal %24 : vector<1x128xf32> -> vector<1x128xf32>
    %cst_15 = arith.constant dense<0.000000e+00> : vector<1x128xf32>
    %26 = tpu.matmul %25, %21, %cst_15 {dimension_numbers = #tpu.dot_dimension_numbers<[1], [0], [0], [1], [0, 0, 1, 1], [], []>} : vector<1x128xf32>, vector<128x128xf32>, vector<1x128xf32> -> vector<1x128xf32>
    %cst_16 = arith.constant 9.99999971E-10 : f32
    %27 = vector.broadcast %cst_16 : f32 to vector<1x128xf32>
    %28 = arith.addf %26, %27 : vector<1x128xf32>
    %29 = tpu.reciprocal %28 : vector<1x128xf32> -> vector<1x128xf32>
    %30 = vector.broadcast %25 : vector<1x128xf32> to vector<32x128xf32>
    %31 = arith.mulf %15, %30 : vector<32x128xf32>
    %cst_17 = arith.constant dense<0.000000e+00> : vector<32x128xf32>
    %32 = tpu.matmul %31, %21, %cst_17 {dimension_numbers = #tpu.dot_dimension_numbers<[1], [0], [0], [1], [0, 0, 1, 1], [], []>} : vector<32x128xf32>, vector<128x128xf32>, vector<32x128xf32> -> vector<32x128xf32>
    %33 = vector.broadcast %29 : vector<1x128xf32> to vector<32x128xf32>
    %34 = arith.mulf %32, %33 : vector<32x128xf32>
    %35 = vector.extract_strided_slice %10 {offsets = [0, 128], sizes = [8, 128], strides = [1, 1]} : vector<8x256xf32> to vector<8x128xf32>
    %36 = vector.extract_strided_slice %13 {offsets = [0, 128], sizes = [32, 128], strides = [1, 1]} : vector<32x256xf32> to vector<32x128xf32>
    %cst_18 = arith.constant dense<0.000000e+00> : vector<128x128xf32>
    %37 = tpu.matmul %35, %35, %cst_18 {dimension_numbers = #tpu.dot_dimension_numbers<[0], [0], [1], [1], [0, 1, 1, 1], [], []>} : vector<8x128xf32>, vector<8x128xf32>, vector<128x128xf32> -> vector<128x128xf32>
    %cst_19 = arith.constant dense<0xFF800000> : vector<128xf32>
    %38 = vector.multi_reduction <maximumf>, %37, %cst_19 [1] : vector<128x128xf32> to vector<128xf32>
    %39 = vector.shape_cast %38 : vector<128xf32> to vector<128x1xf32>
    %40 = vector.broadcast %39 : vector<128x1xf32> to vector<128x128xf32>
    %41 = arith.subf %37, %40 : vector<128x128xf32>
    %42 = math.exp %41 : vector<128x128xf32>
    %cst_20 = arith.constant dense<0.000000e+00> : vector<128xf32>
    %43 = vector.multi_reduction <add>, %42, %cst_20 [1] : vector<128x128xf32> to vector<128xf32>
    %44 = vector.shape_cast %43 : vector<128xf32> to vector<128x1xf32>
    %45 = tpu.transpose %44, [1, 0] : vector<128x1xf32> -> vector<1x128xf32>
    %46 = tpu.reciprocal %45 : vector<1x128xf32> -> vector<1x128xf32>
    %cst_21 = arith.constant dense<0.000000e+00> : vector<1x128xf32>
    %47 = tpu.matmul %46, %42, %cst_21 {dimension_numbers = #tpu.dot_dimension_numbers<[1], [0], [0], [1], [0, 0, 1, 1], [], []>} : vector<1x128xf32>, vector<128x128xf32>, vector<1x128xf32> -> vector<1x128xf32>
    %cst_22 = arith.constant 9.99999971E-10 : f32
    %48 = vector.broadcast %cst_22 : f32 to vector<1x128xf32>
    %49 = arith.addf %47, %48 : vector<1x128xf32>
    %50 = tpu.reciprocal %49 : vector<1x128xf32> -> vector<1x128xf32>
    %51 = vector.broadcast %46 : vector<1x128xf32> to vector<32x128xf32>
    %52 = arith.mulf %36, %51 : vector<32x128xf32>
    %cst_23 = arith.constant dense<0.000000e+00> : vector<32x128xf32>
    %53 = tpu.matmul %52, %42, %cst_23 {dimension_numbers = #tpu.dot_dimension_numbers<[1], [0], [0], [1], [0, 0, 1, 1], [], []>} : vector<32x128xf32>, vector<128x128xf32>, vector<32x128xf32> -> vector<32x128xf32>
    %54 = vector.broadcast %50 : vector<1x128xf32> to vector<32x128xf32>
    %55 = arith.mulf %53, %54 : vector<32x128xf32>
    %56 = tpu.concatenate %34, %55 in 1 : vector<32x128xf32>, vector<32x128xf32> -> vector<32x256xf32>
    %57 = arith.subf %4, %56 : vector<32x256xf32>
    %cst_24 = arith.constant dense<0.000000e+00> : vector<32x256xf32>
    %58 = tpu.matmul %6, %57, %cst_24 {dimension_numbers = #tpu.dot_dimension_numbers<[1], [0], [0], [1], [0, 0, 1, 1], [], []>} : vector<32x32xf32>, vector<32x256xf32>, vector<32x256xf32> -> vector<32x256xf32>
    %59 = vector.broadcast %8 : vector<32x1xf32> to vector<32x256xf32>
    %60 = arith.addf %58, %59 : vector<32x256xf32>
    %cst_25 = arith.constant 0.000000e+00 : f32
    %61 = vector.broadcast %cst_25 : f32 to vector<32x256xf32>
    %62 = arith.maximumf %60, %61 : vector<32x256xf32>
    %63 = arith.addf %4, %62 : vector<32x256xf32>
    %64 = vector.extract_strided_slice %63 {offsets = [0, 0], sizes = [32, 128], strides = [1, 1]} : vector<32x256xf32> to vector<32x128xf32>
    %c0_26 = arith.constant 0 : index
    %c0_27 = arith.constant 0 : index
    %c0_28 = arith.constant 0 : index
    %65 = vector.load %arg5[%c0_26, %c0_27, %c0_28] : memref<2x32x128xf32, #tpu.memory_space<vmem>>, vector<1x32x128xf32>
    %66 = vector.shape_cast %65 : vector<1x32x128xf32> to vector<32x128xf32>
    %67 = vector.shape_cast %64 : vector<32x128xf32> to vector<1x32x128xf32>
    tpu.vector_store %arg5[%c0_26, %c0_27, %c0_28], %67 {strides = array<i32>} : memref<2x32x128xf32, #tpu.memory_space<vmem>>, vector<1x32x128xf32>,
    %68 = vector.extract_strided_slice %63 {offsets = [0, 128], sizes = [32, 128], strides = [1, 1]} : vector<32x256xf32> to vector<32x128xf32>
    %c1_29 = arith.constant 1 : index
    %c0_30 = arith.constant 0 : index
    %c0_31 = arith.constant 0 : index
    %69 = vector.load %arg5[%c1_29, %c0_30, %c0_31] : memref<2x32x128xf32, #tpu.memory_space<vmem>>, vector<1x32x128xf32>
    %70 = vector.shape_cast %69 : vector<1x32x128xf32> to vector<32x128xf32>
    %71 = vector.shape_cast %68 : vector<32x128xf32> to vector<1x32x128xf32>
    tpu.vector_store %arg5[%c1_29, %c0_30, %c0_31], %71 {strides = array<i32>} : memref<2x32x128xf32, #tpu.memory_space<vmem>>, vector<1x32x128xf32>,
    return
  }
  func.func @transform_0(%arg0: i32) -> (i32, i32, i32) {
    %c0_i32 = arith.constant 0 : i32
    %c0_i32_0 = arith.constant 0 : i32
    %c0_i32_1 = arith.constant 0 : i32
    return %arg0, %c0_i32, %c0_i32_0 : i32, i32, i32
  }
  func.func @transform_1(%arg0: i32) -> (i32, i32) {
    %c0_i32 = arith.constant 0 : i32
    %c0_i32_0 = arith.constant 0 : i32
    %c0_i32_1 = arith.constant 0 : i32
    return %c0_i32, %c0_i32_0 : i32, i32
  }
  func.func @transform_2(%arg0: i32) -> (i32, i32) {
    %c0_i32 = arith.constant 0 : i32
    %c0_i32_0 = arith.constant 0 : i32
    %c0_i32_1 = arith.constant 0 : i32
    return %c0_i32, %c0_i32_0 : i32, i32
  }
  func.func @transform_3(%arg0: i32) -> (i32, i32) {
    %c0_i32 = arith.constant 0 : i32
    %c0_i32_0 = arith.constant 0 : i32
    %c0_i32_1 = arith.constant 0 : i32
    return %c0_i32, %c0_i32_0 : i32, i32
  }
  func.func @transform_4(%arg0: i32) -> (i32, i32, i32) {
    %c0_i32 = arith.constant 0 : i32
    %c0_i32_0 = arith.constant 0 : i32
    %c0_i32_1 = arith.constant 0 : i32
    return %arg0, %c0_i32, %c0_i32_0 : i32, i32, i32
  }
}

</mosaic_0001>

<bundles_post_ra>
// kernel: tpu_custom_call.1
= control target key start
LH: loop header
LB: loop body
LE: loop exit
PB: predicated region body
PF: predicated region fallthrough
CT: control target
= control target key end

     0   :  { %9 = vsyncpa [#allocation3], 0  ;;  %s2923_s0 = inlined_call_operand.hbm [shape: f32[4,32,128], index: 0, kind: input, shape index: {}]   ;;  %s2924_s1 = inlined_call_operand.vmem [shape: f32[40,32], index: 1, kind: input, shape index: {}]   ;;  %s2925_s2 = inlined_call_operand.vmem [shape: f32[32,32], index: 2, kind: input, shape index: {}]   ;;  %s2926_s3 = inlined_call_operand.vmem [shape: f32[32,2], index: 3, kind: input, shape index: {}]   ;;  %s2927_s4 = inlined_call_operand.hbm [shape: f32[4,32,128], index: 4, kind: output, shape index: {}]  }
   0x1   :  { %11 = vsyncpa [#allocation3 + $0x1], 0 }
   0x2   :  { %12 = vsyncpa [#allocation4], 0 }
   0x3   :  { %14 = vsyncpa [#allocation4 + $0x1], 0  ;;  %s2479_s15 = smov 0   ;;  %s2481_s16 = smov 0  }
   0x4   :  { %s2483_s17 = smov 0   ;;  %s2485_s18 = smov 0  }
   0x5 LB: > { %s2500_s19 = sadd.s32 4294967295, %s2441_s18   ;;  %s1703_s20 = sadd.s32 4294967294, %s2441_s18   ;;  %s2441_s18 = sphi %s2485_s18, %s2940_s18   ;;  %s2437_s17 = sphi %s2483_s17, %s2939_s17   ;;  %s2433_s16 = sphi %s2481_s16, %s2938_s16   ;;  %s2429_s15 = sphi %s2479_s15, %s2937_s15  }
   0x6   : > { %s2504_s21 = sadd.s32 1, %s2441_s18   ;;  %s27_s22 = sadd.s32 1, %s2437_s17 }
   0x7   : > { %s24_s23 = ssub.s32 %s2441_s18, %s2504_s21  ;;  %p34_p0 = scmp.ne.s32.totalorder %s2437_s17, %s2433_s16 }
   0x8   : > { %p25_p1 = scmp.eq.s32.totalorder %s24_s23, 0  ;;  %p35_p2 = scmp.eq.s32.totalorder %s2441_s18, 0 }
   0x9   : > { %p40_p3 = scmp.ne.s32.totalorder %s2433_s16, %s2429_s15  ;;  %p41_p4 = scmp.eq.s32.totalorder %s2500_s19, 0 }
   0xa   : > { %s2516_s24 = scalar_select %p25_p1, %s2437_s17, %s27_s22  }
   0xb   : > { %p2518_p5 = por %p35_p2, %p34_p0  ;;  %p2522_p6 = por %p41_p4, %p40_p3 }
   0xc   : > { %p127_p7 = scmp.eq.s32.totalorder %s2500_s19, 1  ;;  %p133_p8 = scmp.eq.s32.totalorder %s1703_s20, 1 }
   0xd   : > { %p2218_p10 = scmp.lt.s32.totalorder %s2441_s18, 2  ;;  %s162_s29 = sand.u32 1, %s2437_s17  }
   0xe   : > { %p2529_p11 = por %p127_p7, %p34_p0  ;;  %p2533_p12 = por %p133_p8, %p40_p3 }
   0xf   : > { %s1769_s30 = sshll.u32 %s2441_s18, 10  ;;  %s1706_s5 = sshll.u32 %s162_s29, 6 }
  0x10   : > { %s2931_s27 = scalar_select %p2529_p11, 1, 0 }
  0x11   : > { %s2932_s28 = scalar_select %p2533_p12, 1, 0 }
  0x12   : > { %s2542_s8 = scalar_lea.hbm %s2923_s0, %s1769_s30  ;;  %s166_s9 = scalar_lea.vmem [#allocation2], %s1706_s5 }
  0x13   : > { %s174_s10 = sshll.u32 %s166_s9, 4  ;;  %p2546_p13 = pnand %p2218_p10, %p2518_p5  ;;  %s2550_s10 = int_to_ptr.vmem [resolvable:$true] %s174_s10 }
  0x14   : > { %s2552_s12 = scalar_lea.sflag [#allocation3], %s162_s29  ;;  %s2345_s13 = scalar_lea.hbm %s2542_s8, 1024 }
  0x15   : > { %p2346_p0 = scmp.ne.s32.totalorder %s2542_s8, %s2345_s13  ;;  %p2347_p1 = pneg %p2546_p13 }
  0x16   : > { %s2350_s22 = scalar_lea.hbm %s2923_s0, 2048  ;;  %p2351_p4 = scmp.lt.u32.totalorder %s2542_s8, %s2923_s0 }
  0x17   : > { %p2348_p2 = pnand %p2347_p1, %p2346_p0  ;;  %p2352_p5 = scmp.lt.u32.totalorder %s2350_s22, %s2345_s13 }
  0x18   : > { %p2354_p8 = scmp.lt.u32.totalorder %s2345_s13, %s2542_s8 }
  0x19   : > { %p2349_p3 = pneg %p2348_p2  ;;  %p2353_p7 = por %p2352_p5, %p2351_p4 }
  0x1b   : > { %p2355_p10 = por %p2354_p8, %p2353_p7 }
  0x1d   : > { %p2356_p9 = pnand %p2355_p10, %p2349_p3 }
  0x1f   : > { %2359 = shalt.err (!%p2356_p9)
}
  0x20   : > { %s2360_s29 = scalar_lea.vmem %s2550_s10, 1024  ;;  %s2443_s30 = smov [#allocation2]  }
  0x21   : > { %p2361_p0 = scmp.ne.s32.totalorder %s2550_s10, %s2360_s29  ;;  %s2365_s5 = sshll.u32 %s2443_s30, 4  ;;  %s2366_s5 = int_to_ptr.vmem [resolvable:$false] %s2365_s5 }
  0x22   : > { %s2367_s6 = scalar_lea.vmem %s2366_s5, 2048  ;;  %p2368_p11 = scmp.lt.s32.totalorder %s2550_s10, %s2366_s5 }
  0x23   : > { %p2363_p2 = pnand %p2361_p0, %p2347_p1  ;;  %p2369_p4 = scmp.lt.s32.totalorder %s2367_s6, %s2360_s29 }
  0x25   : > { %p2364_p12 = pneg %p2363_p2  ;;  %p2370_p5 = por %p2369_p4, %p2368_p11 }
  0x27   : > { %p2371_p7 = pnand %p2370_p5, %p2364_p12 }
  0x29   : > { %2374 = shalt.err (!%p2371_p7)
}
  0x2a   : > { %s2444_s7 = smov 128   ;;  %s2445_s9 = smov 8  }
  0x2b   : > { %2213 = dma.hbm_to_vmem [thread:$0]  (!%p2546_p13), %s2542_s8, 1024, %s2550_s10, %s2552_s12, %s2444_s7, %s2444_s7, %s2445_s9  }
  0x2c   : > { %p1710_p9 = scmp.ge.s32.totalorder %s2441_s18, 1  ;;  %p182_p1 = scmp.lt.s32.totalorder %s2441_s18, 3 }
  0x2e   : > { %p183_p3 = pnand %p1710_p9, %p182_p1 }
  0x2f   : > { %s2583_s13 = sand.u32 (!%p183_p3), 1, %s2433_s16  }
  0x30   : > { %186 = sbr.rel (%p183_p3) target bundleno = 2272 (0x8e0), region = 36  ;;  %s1711_s14 = sshll.u32 (!%p183_p3), %s2583_s13, 6 }
  0x31   : > { %s189_s20 = scalar_lea.sflag (!%p183_p3), [#allocation3], %s2583_s13  ;;  %s2589_s22 = scalar_lea.vmem (!%p183_p3), [#allocation2], %s1711_s14 }
  0x37   : > { %2420 = dma.done.wait (%p2522_p6), %s189_s20, 1024  }
  0x38   : > { %2422 = vsyncadd (%p2522_p6), %s189_s20, 4294966272  ;;  %v2446_v0 = vmov 0.0   ;;  %v1713_v1 = vld [vmem:[%s2589_s22 + $0x20] sm:$0xff]  ;;  %v1714_v2 = vld [vmem:[%s2589_s22 + $0x28] sm:$0xff]  ;;  %vm241_vm0 = vcmask 261120   ;;  %vm412_vm1 = vcmask 64512  }
  0x39   : > { %321 = vmatprep.mubr.f32.mxu0 %v2446_v0  ;;  %v2599_v3 = vld [vmem:[%s2589_s22] sm:$0xff]  ;;  %v2078_v4 = vpack.c.bf16 %v1714_v2, %v1713_v1  ;;  %v2602_v5 = vld [vmem:[%s2589_s22 + $0x8] sm:$0xff]  ;;  %v1715_v6 = vld [vmem:[%s2589_s22 + $0x30] sm:$0xff]  ;;  %v2447_v45 = vmov 0.0|0.0   ;;  %v2448_v53 = vmov 0   ;;  %vm2449_vm2 = vmmov 0  }
  0x3a   : > { %v1716_v7 = vld [vmem:[%s2589_s22 + $0x38] sm:$0xff]  ;;  %v2080_v8 = vpack.c.bf16 %v2602_v5, %v2599_v3  ;;  %v2609_v10 = vld [vmem:[%s2589_s22 + $0x10] sm:$0xff]  ;;  %v228_v13 = vld [vmem:[%s2924_s1] sm:$0xff]  ;;  %2261 = vset.pattern.permute.xlu1 %v2448_v53  ;;  %s2858_s9 = scalar_lea.vmem [#allocation5], %s1711_s14  ;;  %s1771_s20 = sshll.u32 %s2500_s19, 10 }
  0x3b   : > { %v2082_v9 = vpack.c.bf16 %v1716_v7, %v1715_v6  ;;  %v2612_v11 = vld [vmem:[%s2589_s22 + $0x18] sm:$0xff]  ;;  %2079 = vmatprep.subr.bf16.mxu0 %v2078_v4  ;;  %v229_v32 = vld [vmem:[%s2924_s1 + $0x8] sm:$0xff]  ;;  %v230_v37 = vld [vmem:[%s2924_s1 + $0x10] sm:$0xff]  ;;  %s1630_s14 = sshll.u32 %s2858_s9, 4  ;;  %s2876_s10 = scalar_lea.hbm %s2927_s4, %s1771_s20  ;;  %s2869_s14 = int_to_ptr.vmem [resolvable:$true] %s1630_s14 }
  0x3c   : > { %2081 = vmatpush1.bf16.msra.mxu0 %v2080_v8  ;;  %v2084_v12 = vpack.c.bf16 %v2612_v11, %v2609_v10  ;;  %v231_v40 = vld [vmem:[%s2924_s1 + $0x18] sm:$0xff]  ;;  %v232_v41 = vld [vmem:[%s2924_s1 + $0x20] sm:$0xff]  ;;  %s1616_s19 = scalar_lea.sflag [#allocation4], %s2583_s13  ;;  %s2375_s11 = scalar_lea.vmem %s2869_s14, 1024 }
  0x3d   : > { %2083 = vmatprep.subr.bf16.mxu0 %v2082_v9  ;;  %p2376_p6 = scmp.ne.s32.totalorder %s2869_s14, %s2375_s11  ;;  %p2934_p11 = scmp.ne.s32.totalorder %s2931_s27, 0 }
  0x3e   : > { %s2451_s12 = smov [#allocation5]  }
  0x3f   : > { %p2377_p12 = pnand %p2376_p6, %p2934_p11  ;;  %s2379_s23 = sshll.u32 %s2451_s12, 4  ;;  %s2380_s23 = int_to_ptr.vmem [resolvable:$false] %s2379_s23 }
  0x40   : > { %2085 = vmatpush1.bf16.msra.mxu0 %v2084_v12  ;;  %p2382_p8 = scmp.lt.s32.totalorder %s2869_s14, %s2380_s23 }
  0x41   : > { %p2378_p13 = pneg %p2377_p12 }
  0x43   : > { %1717 = vmatmul.mubr.msk.f32.vlgmr.msra.gmra.mrb[0].mxu0 %vm241_vm0, %v228_v13 }
  0x44   : > { %327 = vmatprep.mubr.f32.mxu0 %v2446_v0 }
  0x47   : > { %1718 = vmatmul.mubr.msk.f32.gmra.mrb[2].mxu0 %vm241_vm0, %v229_v32 }
  0x48   : > { %333 = vmatprep.mubr.f32.mxu0 %v2446_v0 }
  0x4b   : > { %1719 = vmatmul.mubr.msk.f32.gmra.mrb[4].mxu0 %vm241_vm0, %v230_v37 }
  0x4c   : > { %339 = vmatprep.mubr.f32.mxu0 %v2446_v0 }
  0x4f   : > { %1720 = vmatmul.mubr.msk.f32.gmra.mrb[6].mxu0 %vm241_vm0, %v231_v40 }
  0x50   : > { %345 = vmatprep.mubr.f32.mxu0 %v2446_v0 }
  0x53   : > { %1721 = vmatmul.mubr.msk.f32.gmra.mrb[8].mxu0 %vm241_vm0, %v232_v41 }
 0x116   : > { %v323_v14 = vpop.f32.mrb[0].mxu0 }
 0x117   : > { %380 = vxpose.xlu0.b32.start.end [1/1] (short) %v323_v14, 128  ;;  %v2621_v15 = vpop.f32.mrb[1].mxu0  ;;  %1880 = vmatprep.subr.mxu1 %v323_v14 }
 0x118   : > { %1881 = vmatpush3.msra.mxu1 %v323_v14 }
 0x119   : > { %2086 = vmatprep.subr.bf16.mxu1 %v2447_v45 }
 0x140   : > { %2262 = vset.pattern.permute.xlu0 %v2448_v53 }
 0x197   : > { %v396_v16 = vpop.trf.xlu0 }
 0x198   : > { %1882 = vmatprep.mubr.msk.f32.mxu1 %vm412_vm1, %v396_v16 }
 0x19b   : > { %v397_v17 = vpop.trf.xlu0 }
 0x19c   : > { %1883 = vmatmul.mubr.msk.f32.vlgmr.msra.gmra.mrb[0].mxu1 %vm412_vm1, %v397_v17 }
 0x19f   : > { %v398_v18 = vpop.trf.xlu0 }
 0x1a0   : > { %1885 = vmatprep.mubr.msk.f32.mxu1 %vm412_vm1, %v398_v18 }
 0x1a3   : > { %v399_v19 = vpop.trf.xlu0 }
 0x1a4   : > { %1886 = vmatmul.mubr.msk.f32.gmra.mrb[2].mxu1 %vm412_vm1, %v399_v19 }
 0x1a7   : > { %v400_v20 = vpop.trf.xlu0 }
 0x1a8   : > { %1888 = vmatprep.mubr.msk.f32.mxu1 %vm412_vm1, %v400_v20 }
 0x1ab   : > { %v401_v21 = vpop.trf.xlu0 }
 0x1ac   : > { %1889 = vmatmul.mubr.msk.f32.gmra.mrb[4].mxu1 %vm412_vm1, %v401_v21 }
 0x1af   : > { %v402_v22 = vpop.trf.xlu0 }
 0x1b0   : > { %1891 = vmatprep.mubr.msk.f32.mxu1 %vm412_vm1, %v402_v22 }
 0x1b3   : > { %v403_v23 = vpop.trf.xlu0 }
 0x1b4   : > { %1892 = vmatmul.mubr.msk.f32.gmra.mrb[6].mxu1 %vm412_vm1, %v403_v23 }
 0x1b7   : > { %v404_v24 = vpop.trf.xlu0 }
 0x1b8   : > { %1894 = vmatprep.mubr.msk.f32.mxu1 %vm412_vm1, %v404_v24 }
 0x1bb   : > { %v405_v25 = vpop.trf.xlu0 }
 0x1bc   : > { %1895 = vmatmul.mubr.msk.f32.gmra.mrb[8].mxu1 %vm412_vm1, %v405_v25 }
 0x1bf   : > { %v406_v26 = vpop.trf.xlu0 }
 0x1c0   : > { %1897 = vmatprep.mubr.msk.f32.mxu1 %vm412_vm1, %v406_v26 }
 0x1c3   : > { %v407_v27 = vpop.trf.xlu0 }
 0x1c4   : > { %1898 = vmatmul.mubr.msk.f32.gmra.mrb[10].mxu1 %vm412_vm1, %v407_v27 }
 0x1c7   : > { %v408_v28 = vpop.trf.xlu0 }
 0x1c8   : > { %1900 = vmatprep.mubr.msk.f32.mxu1 %vm412_vm1, %v408_v28 }
 0x1cb   : > { %v409_v29 = vpop.trf.xlu0 }
 0x1cc   : > { %1901 = vmatmul.mubr.msk.f32.gmra.mrb[12].mxu1 %vm412_vm1, %v409_v29 }
 0x1cf   : > { %v410_v30 = vpop.trf.xlu0 }
 0x1d0   : > { %1903 = vmatprep.mubr.msk.f32.mxu1 %vm412_vm1, %v410_v30 }
 0x1d3   : > { %v411_v31 = vpop.trf.xlu0 }
 0x1d4   : > { %1904 = vmatmul.mubr.msk.f32.gmra.mrb[14].mxu1 %vm412_vm1, %v411_v31 }
 0x1d5   : > { %1938 = vmatprep.mubr.msk.f32.mxu1 %vm2449_vm2, %v2446_v0 }
 0x26f   : > { %v1884_v33 = vpop.f32.mrb[0].mxu1 }
 0x270   : > { %608 = vmax.xlane.f32.xlu1 %v1884_v33  ;;  %v527_v34 = vpop.f32.mrb[1].mxu1 }
 0x271   : > { %606 = vmax.xlane.f32.xlu0 %v527_v34 }
 0x277   : > { %v1887_v35 = vpop.f32.mrb[2].mxu1 }
 0x278   : > { %612 = vmax.xlane.f32.xlu1 %v1887_v35  ;;  %v537_v36 = vpop.f32.mrb[3].mxu1 }
 0x27c   : > { %610 = vmax.xlane.f32.xlu1 %v537_v36 }
 0x27f   : > { %v1890_v38 = vpop.f32.mrb[4].mxu1 }
 0x280   : > { %616 = vmax.xlane.f32.xlu1 %v1890_v38  ;;  %v2649_v39 = vpop.f32.mrb[5].mxu1 }
 0x284   : > { %614 = vmax.xlane.f32.xlu1 %v2649_v39 }
 0x287   : > { %v2661_v42 = vpop.f32.mrb[6].mxu1 }
 0x288   : > { %620 = vmax.xlane.f32.xlu1 %v2661_v42  ;;  %v2664_v43 = vpop.f32.mrb[7].mxu1 }
 0x28c   : > { %618 = vmax.xlane.f32.xlu1 %v2664_v43 }
 0x28f   : > { %v2667_v44 = vpop.f32.mrb[8].mxu1 }
 0x290   : > { %624 = vmax.xlane.f32.xlu1 %v2667_v44  ;;  %v2671_v46 = vpop.f32.mrb[9].mxu1 }
 0x294   : > { %622 = vmax.xlane.f32.xlu1 %v2671_v46 }
 0x297   : > { %v2674_v47 = vpop.f32.mrb[10].mxu1 }
 0x298   : > { %628 = vmax.xlane.f32.xlu1 %v2674_v47  ;;  %v2677_v48 = vpop.f32.mrb[11].mxu1 }
 0x29c   : > { %626 = vmax.xlane.f32.xlu1 %v2677_v48 }
 0x29f   : > { %v2680_v49 = vpop.f32.mrb[12].mxu1 }
 0x2a0   : > { %632 = vmax.xlane.f32.xlu1 %v2680_v49  ;;  %v2683_v50 = vpop.f32.mrb[13].mxu1 }
 0x2a4   : > { %630 = vmax.xlane.f32.xlu1 %v2683_v50 }
 0x2a7   : > { %v2686_v51 = vpop.f32.mrb[14].mxu1 }
 0x2a8   : > { %636 = vmax.xlane.f32.xlu1 %v2686_v51  ;;  %v2689_v52 = vpop.f32.mrb[15].mxu1 }
 0x2ac   : > { %634 = vmax.xlane.f32.xlu1 %v2689_v52 }
 0x2fd   : > { %v609_v54 = vpop.xlane.xlu1 %608 }
 0x2fe   : > { %v639_v55 = vsub.f32 %v1884_v33, %v609_v54  ;;  %v607_v56 = vpop.xlane.xlu0 %606 }
 0x2ff   : > { %v638_v57 = vsub.f32 %v527_v34, %v607_v56 }
 0x300   : > { %v656_v58 = vmul.f32 1.442695, %v639_v55 }
 0x301   : > { %v654_v59 = vmul.f32 1.442695, %v638_v57 }
 0x302   : > { %2265 = vpow2.f32 %v656_v58 }
 0x303   : > { %2267 = vpow2.f32 %v654_v59 }
 0x305   : > { %v613_v60 = vpop.xlane.xlu1 %612 }
 0x306   : > { %v641_v61 = vsub.f32 %v1887_v35, %v613_v60 }
 0x308   : > { %v660_v62 = vmul.f32 1.442695, %v641_v61 }
 0x309   : > { %v611_v63 = vpop.xlane.xlu1 %610 }
 0x30a   : > { %2269 = vpow2.f32 %v660_v62  ;;  %v640_v1 = vsub.f32 %v537_v36, %v611_v63 }
 0x30c   : > { %v2266_v2 = vpop.eup %2265  ;;  %v658_v4 = vmul.f32 1.442695, %v640_v1 }
 0x30d   : > { %v2268_v6 = vpop.eup %2267  ;;  %v617_v7 = vpop.xlane.xlu1 %616  ;;  %688 = vadd.xlane.f32.xlu1 %v2266_v2 }
 0x30e   : > { %2271 = vpow2.f32 %v658_v4  ;;  %v643_v8 = vsub.f32 %v1890_v38, %v617_v7  ;;  %v2087_v9 = vpack.c.bf16 %v2266_v2, %v2268_v6 }
 0x310   : > { %v664_v12 = vmul.f32 1.442695, %v643_v8  ;;  %2088 = vmatpush3.bf16.msra.mxu1 %v2087_v9  ;;  %2111 = vmatprep.subr.bf16.mxu0 %v2087_v9  ;;  %v2715_v8 = vld [vmem:[%s2926_s3] sm:$0xff] }
 0x311   : > { %2113 = vmatpush3.bf16.msra.mxu0 %v2087_v9  ;;  %v615_v13 = vpop.xlane.xlu1 %614  ;;  %686 = vadd.xlane.f32.xlu1 %v2268_v6  ;;  %v329_v9 = vpop.f32.mrb[2].mxu0 }
 0x312   : > { %2273 = vpow2.f32 %v664_v12  ;;  %v642_v14 = vsub.f32 %v2649_v39, %v615_v13  ;;  %2089 = vmatprep.subr.bf16.mxu1 %v2447_v45  ;;  %v331_v12 = vpop.f32.mrb[3].mxu0  ;;  %v2721_v13 = vld [vmem:[%s2926_s3 + $0x10] sm:$0xff] }
 0x314   : > { %v2270_v16 = vpop.eup %2269  ;;  %v662_v17 = vmul.f32 1.442695, %v642_v14  ;;  %v2723_v14 = vpop.f32.mrb[4].mxu0 }
 0x315   : > { %v621_v18 = vpop.xlane.xlu1 %620  ;;  %692 = vadd.xlane.f32.xlu1 %v2270_v16 }
 0x316   : > { %2275 = vpow2.f32 %v662_v17  ;;  %v645_v19 = vsub.f32 %v2661_v42, %v621_v18 }
 0x318   : > { %v2272_v20 = vpop.eup %2271  ;;  %v668_v21 = vmul.f32 1.442695, %v645_v19  ;;  %v2729_v19 = vld [vmem:[%s2926_s3 + $0x18] sm:$0xff] }
 0x319   : > { %v619_v22 = vpop.xlane.xlu1 %618  ;;  %690 = vadd.xlane.f32.xlu1 %v2272_v20  ;;  %v2090_v23 = vpack.c.bf16 %v2270_v16, %v2272_v20  ;;  %v337_v16 = vpop.f32.mrb[5].mxu0  ;;  %v2734_v20 = vld [vmem:[%s2926_s3 + $0x8] sm:$0xff] }
 0x31a   : > { %2277 = vpow2.f32 %v668_v21  ;;  %v644_v24 = vsub.f32 %v2664_v43, %v619_v22  ;;  %v341_v17 = vpop.f32.mrb[6].mxu0 }
 0x31b   : > { %2091 = vmatpush3.bf16.msra.mxu1 %v2090_v23  ;;  %2115 = vmatprep.subr.bf16.mxu0 %v2090_v23  ;;  %v343_v18 = vpop.f32.mrb[7].mxu0 }
 0x31c   : > { %v2274_v25 = vpop.eup %2273  ;;  %v666_v26 = vmul.f32 1.442695, %v644_v24  ;;  %2117 = vmatpush3.bf16.msra.mxu0 %v2090_v23  ;;  %2092 = vmatprep.subr.bf16.mxu1 %v2447_v45  ;;  %v347_v21 = vpop.f32.mrb[8].mxu0 }
 0x31d   : > { %v625_v27 = vpop.xlane.xlu1 %624  ;;  %696 = vadd.xlane.f32.xlu1 %v2274_v25  ;;  %v349_v22 = vpop.f32.mrb[9].mxu0 }
 0x31e   : > { %2279 = vpow2.f32 %v666_v26  ;;  %v647_v28 = vsub.f32 %v2667_v44, %v625_v27 }
 0x320   : > { %v2276_v29 = vpop.eup %2275  ;;  %v672_v30 = vmul.f32 1.442695, %v647_v28 }
 0x321   : > { %v623_v31 = vpop.xlane.xlu1 %622  ;;  %694 = vadd.xlane.f32.xlu1 %v2276_v29  ;;  %v2093_v32 = vpack.c.bf16 %v2274_v25, %v2276_v29 }
 0x322   : > { %2281 = vpow2.f32 %v672_v30  ;;  %v646_v33 = vsub.f32 %v2671_v46, %v623_v31 }
 0x323   : > { %2094 = vmatpush3.bf16.msra.mxu1 %v2093_v32  ;;  %2119 = vmatprep.subr.bf16.mxu0 %v2093_v32 }
 0x324   : > { %v2278_v34 = vpop.eup %2277  ;;  %v670_v35 = vmul.f32 1.442695, %v646_v33  ;;  %2121 = vmatpush3.bf16.msra.mxu0 %v2093_v32  ;;  %2095 = vmatprep.subr.bf16.mxu1 %v2447_v45 }
 0x325   : > { %v629_v36 = vpop.xlane.xlu1 %628  ;;  %700 = vadd.xlane.f32.xlu1 %v2278_v34 }
 0x326   : > { %2283 = vpow2.f32 %v670_v35  ;;  %v649_v37 = vsub.f32 %v2674_v47, %v629_v36 }
 0x328   : > { %v2280_v38 = vpop.eup %2279  ;;  %v676_v39 = vmul.f32 1.442695, %v649_v37 }
 0x329   : > { %v627_v40 = vpop.xlane.xlu1 %626  ;;  %698 = vadd.xlane.f32.xlu1 %v2280_v38  ;;  %v2096_v41 = vpack.c.bf16 %v2278_v34, %v2280_v38 }
 0x32a   : > { %2285 = vpow2.f32 %v676_v39  ;;  %v648_v42 = vsub.f32 %v2677_v48, %v627_v40 }
 0x32b   : > { %2097 = vmatpush3.bf16.msra.mxu1 %v2096_v41  ;;  %2123 = vmatprep.subr.bf16.mxu0 %v2096_v41 }
 0x32c   : > { %v2282_v43 = vpop.eup %2281  ;;  %v674_v44 = vmul.f32 1.442695, %v648_v42  ;;  %2125 = vmatpush3.bf16.msra.mxu0 %v2096_v41  ;;  %2098 = vmatprep.subr.bf16.mxu1 %v2447_v45 }
 0x32d   : > { %v633_v46 = vpop.xlane.xlu1 %632  ;;  %704 = vadd.xlane.f32.xlu1 %v2282_v43 }
 0x32e   : > { %2287 = vpow2.f32 %v674_v44  ;;  %v651_v47 = vsub.f32 %v2680_v49, %v633_v46 }
 0x330   : > { %v2284_v53 = vpop.eup %2283  ;;  %v680_v54 = vmul.f32 1.442695, %v651_v47 }
 0x331   : > { %v631_v55 = vpop.xlane.xlu1 %630  ;;  %702 = vadd.xlane.f32.xlu1 %v2284_v53  ;;  %v2099_v56 = vpack.c.bf16 %v2282_v43, %v2284_v53 }
 0x332   : > { %2289 = vpow2.f32 %v680_v54  ;;  %v650_v48 = vsub.f32 %v2683_v50, %v631_v55 }
 0x333   : > { %2100 = vmatpush3.bf16.msra.mxu1 %v2099_v56  ;;  %2127 = vmatprep.subr.bf16.mxu0 %v2099_v56 }
 0x334   : > { %v2286_v57 = vpop.eup %2285  ;;  %v678_v58 = vmul.f32 1.442695, %v650_v48  ;;  %2129 = vmatpush3.bf16.msra.mxu0 %v2099_v56  ;;  %2101 = vmatprep.subr.bf16.mxu1 %v2447_v45 }
 0x335   : > { %v637_v59 = vpop.xlane.xlu1 %636  ;;  %708 = vadd.xlane.f32.xlu1 %v2286_v57 }
 0x336   : > { %2291 = vpow2.f32 %v678_v58  ;;  %v653_v49 = vsub.f32 %v2686_v51, %v637_v59 }
 0x338   : > { %v2288_v60 = vpop.eup %2287  ;;  %v684_v61 = vmul.f32 1.442695, %v653_v49 }
 0x339   : > { %706 = vadd.xlane.f32.xlu1 %v2288_v60  ;;  %v635_v62 = vpop.xlane.xlu1 %634  ;;  %v2102_v63 = vpack.c.bf16 %v2286_v57, %v2288_v60 }
 0x33a   : > { %2293 = vpow2.f32 %v684_v61  ;;  %v652_v50 = vsub.f32 %v2689_v52, %v635_v62  ;;  %v822_v61 = vlaneseq }
 0x33b   : > { %2103 = vmatpush3.bf16.msra.mxu1 %v2102_v63  ;;  %2131 = vmatprep.subr.bf16.mxu0 %v2102_v63 }
 0x33c   : > { %v2290_v1 = vpop.eup %2289  ;;  %v682_v2 = vmul.f32 1.442695, %v652_v50  ;;  %2133 = vmatpush3.bf16.msra.mxu0 %v2102_v63  ;;  %2104 = vmatprep.subr.bf16.mxu1 %v2447_v45  ;;  %v823_v50 = vshrl.u32 %v822_v61, 7 }
 0x33d   : > { %712 = vadd.xlane.f32.xlu0 %v2290_v1 }
 0x33e   : > { %2295 = vpow2.f32 %v682_v2 }
 0x340   : > { %v2292_v4 = vpop.eup %2291 }
 0x341   : > { %710 = vadd.xlane.f32.xlu1 %v2292_v4  ;;  %v2105_v51 = vpack.c.bf16 %v2290_v1, %v2292_v4  ;;  %v2749_v1 = vsub.s32 0, %v823_v50 }
 0x343   : > { %2106 = vmatpush3.bf16.msra.mxu1 %v2105_v51  ;;  %2135 = vmatprep.subr.bf16.mxu0 %v2105_v51 }
 0x344   : > { %v2294_v6 = vpop.eup %2293  ;;  %2137 = vmatpush3.bf16.msra.mxu0 %v2105_v51  ;;  %2107 = vmatprep.subr.bf16.mxu1 %v2447_v45 }
 0x345   : > { %716 = vadd.xlane.f32.xlu0 %v2294_v6 }
 0x348   : > { %v2296_v52 = vpop.eup %2295 }
 0x349   : > { %v2108_v7 = vpack.c.bf16 %v2294_v6, %v2296_v52 }
 0x34b   : > { %2109 = vmatpush3.bf16.msra.mxu1 %v2108_v7  ;;  %2139 = vmatprep.subr.bf16.mxu0 %v2108_v7 }
 0x34c   : > { %2141 = vmatpush3.bf16.msra.mxu0 %v2108_v7  ;;  %2142 = vmatprep.subr.bf16.mxu1 %v2447_v45 }
 0x34d   : > { %1979 = vmatprep.subr.mxu0 %v2621_v15 }
 0x352   : > { %354 = vperm.xlu1 %2261, %v2715_v8  }
 0x356   : > { %364 = vperm.xlu1 %2261, %v2721_v13  }
 0x35a   : > { %369 = vperm.xlu1 %2261, %v2729_v19  }
 0x35b   : > { %359 = vperm.xlu0 %2262, %v2734_v20  }
 0x379   : > { %923 = vxpose.xlu0.b32.start.end [1/1] (short) %v2621_v15, 128 }
 0x37e   : > { %714 = vadd.xlane.f32.xlu1 %v2296_v52 }
 0x39a   : > { %v689_v23 = vpop.xlane.xlu1 %688 }
 0x39e   : > { %v687_v24 = vpop.xlane.xlu1 %686 }
 0x3a2   : > { %v693_v25 = vpop.xlane.xlu1 %692 }
 0x3a6   : > { %v691_v26 = vpop.xlane.xlu1 %690 }
 0x3aa   : > { %v697_v27 = vpop.xlane.xlu1 %696 }
 0x3ae   : > { %v695_v28 = vpop.xlane.xlu1 %694 }
 0x3b1   : > { %718 = vxpose.xlu1.b32.start [1/16] (narrow) %v687_v24, 8 }
 0x3b2   : > { %v701_v29 = vpop.xlane.xlu1 %700 }
 0x3b5   : > { %719 = vxpose.xlu1.b32.cont [2/16] (narrow) %v689_v23, 8 }
 0x3b6   : > { %v699_v30 = vpop.xlane.xlu1 %698 }
 0x3b9   : > { %720 = vxpose.xlu1.b32.cont [3/16] (narrow) %v691_v26, 8 }
 0x3ba   : > { %v705_v31 = vpop.xlane.xlu1 %704 }
 0x3bd   : > { %721 = vxpose.xlu1.b32.cont [4/16] (narrow) %v693_v25, 8 }
 0x3be   : > { %v703_v32 = vpop.xlane.xlu1 %702 }
 0x3c1   : > { %722 = vxpose.xlu1.b32.cont [5/16] (narrow) %v695_v28, 8 }
 0x3c2   : > { %v709_v33 = vpop.xlane.xlu1 %708 }
 0x3c5   : > { %723 = vxpose.xlu1.b32.cont [6/16] (narrow) %v697_v27, 8 }
 0x3c6   : > { %v707_v34 = vpop.xlane.xlu1 %706 }
 0x3c9   : > { %724 = vxpose.xlu1.b32.cont [7/16] (narrow) %v699_v30, 8 }
 0x3ca   : > { %v713_v36 = vpop.xlane.xlu0 %712 }
 0x3cd   : > { %725 = vxpose.xlu1.b32.cont [8/16] (narrow) %v701_v29, 8 }
 0x3ce   : > { %v711_v35 = vpop.xlane.xlu1 %710 }
 0x3d1   : > { %726 = vxpose.xlu1.b32.cont [9/16] (narrow) %v703_v32, 8 }
 0x3d2   : > { %v355_v37 = vpop.permute.xlu1 %354  ;;  %v717_v40 = vpop.xlane.xlu0 %716 }
 0x3d3   : > { %v372_v38 = vadd.f32 %v355_v37, %v329_v9  ;;  %v2739_v39 = vadd.f32 %v355_v37, %v331_v12 }
 0x3d5   : > { %727 = vxpose.xlu1.b32.cont [10/16] (narrow) %v705_v31, 8 }
 0x3d6   : > { %v365_v41 = vpop.permute.xlu1 %364 }
 0x3d7   : > { %v376_v42 = vadd.f32 %v365_v41, %v341_v17  ;;  %v2741_v43 = vadd.f32 %v365_v41, %v343_v18 }
 0x3d9   : > { %728 = vxpose.xlu1.b32.cont [11/16] (narrow) %v707_v34, 8 }
 0x3da   : > { %v370_v44 = vpop.permute.xlu1 %369  ;;  %v360_v46 = vpop.permute.xlu0 %359 }
 0x3db   : > { %v378_v47 = vadd.f32 %v370_v44, %v347_v21  ;;  %v2743_v53 = vadd.f32 %v370_v44, %v349_v22  ;;  %v2745_v54 = vadd.f32 %v360_v46, %v337_v16  ;;  %v374_v51 = vadd.f32 %v360_v46, %v2723_v14 }
 0x3dd   : > { %729 = vxpose.xlu1.b32.cont [12/16] (narrow) %v709_v33, 8 }
 0x3e1   : > { %730 = vxpose.xlu1.b32.cont [13/16] (narrow) %v711_v35, 8 }
 0x3e5   : > { %731 = vxpose.xlu1.b32.cont [14/16] (narrow) %v713_v36, 8 }
 0x3f9   : > { %v939_v56 = vpop.trf.xlu0 }
 0x3fd   : > { %v940_v48 = vpop.trf.xlu0 }
 0x401   : > { %v941_v57 = vpop.trf.xlu0 }
 0x405   : > { %v942_v58 = vpop.trf.xlu0 }
 0x409   : > { %v943_v59 = vpop.trf.xlu0 }
 0x40b   : > { %v715_v55 = vpop.xlane.xlu1 %714 }
 0x40c   : > { %732 = vxpose.xlu1.b32.cont [15/16] (narrow) %v715_v55, 8 }
 0x40d   : > { %v944_v49 = vpop.trf.xlu0 }
 0x410   : > { %733 = vxpose.xlu1.b32.end [16/16] (narrow) %v717_v40, 8 }
 0x411   : > { %v945_v60 = vpop.trf.xlu0 }
 0x415   : > { %v946_v63 = vpop.trf.xlu0 }
 0x419   : > { %v947_v2 = vpop.trf.xlu0 }
 0x41d   : > { %v948_v9 = vpop.trf.xlu0 }
 0x421   : > { %v949_v17 = vpop.trf.xlu0 }
 0x425   : > { %v950_v14 = vpop.trf.xlu0 }
 0x429   : > { %v951_v18 = vpop.trf.xlu0 }
 0x454   : > { %v734_v62 = vpop.trf.xlu1 }
 0x455   : > { %2297 = vrcp.f32 %v734_v62 }
 0x45f   : > { %v2298_v4 = vpop.eup %2297 }
 0x460   : > { %v825_v6 = vrot.slane %v2298_v4, %v2749_v1  ;;  %1939 = vmatmul.mubr.f32.vlgmr.msra.gmra.mrb[16].mxu1 %v2298_v4 }
 0x461   : > { %2037 = vmatprep.mubr.msk.f32.mxu1 %vm2449_vm2, %v2446_v0 }
 0x462   : > { %v826_v52 = vmul.f32 %v825_v6, %v372_v38  ;;  %v827_v7 = vmul.f32 %v825_v6, %v374_v51  ;;  %v828_v12 = vmul.f32 %v825_v6, %v376_v42  ;;  %v829_v16 = vmul.f32 %v825_v6, %v378_v47 }
 0x464   : > { %1973 = vmatprep.mubr.f32.mxu0 %v826_v52 }
 0x465   : > { %1974 = vmatmul.mubr.f32.vlgmr.msra.gmra.mrb[10].mxu0 %v827_v7 }
 0x466   : > { %1980 = vmatpush3.msra.mxu0 %v2621_v15  ;;  %1976 = vmatprep.mubr.f32.mxu0 %v828_v12  ;;  %v952_v15 = vpop.trf.xlu0 }
 0x469   : > { %1977 = vmatmul.mubr.f32.gmra.mrb[12].mxu0 %v829_v16 }
 0x46a   : > { %1981 = vmatprep.mubr.msk.f32.mxu0 %vm412_vm1, %v939_v56  ;;  %v953_v21 = vpop.trf.xlu0 }
 0x46d   : > { %1982 = vmatmul.mubr.msk.f32.vlgmr.msra.gmra.mrb[14].mxu0 %vm412_vm1, %v940_v48 }
 0x46e   : > { %1984 = vmatprep.mubr.msk.f32.mxu0 %vm412_vm1, %v941_v57  ;;  %v954_v22 = vpop.trf.xlu0 }
 0x471   : > { %1985 = vmatmul.mubr.msk.f32.gmra.mrb[16].mxu0 %vm412_vm1, %v942_v58 }
 0x472   : > { %1987 = vmatprep.mubr.msk.f32.mxu0 %vm412_vm1, %v943_v59 }
 0x475   : > { %1988 = vmatmul.mubr.msk.f32.gmra.mrb[18].mxu0 %vm412_vm1, %v944_v49 }
 0x476   : > { %1990 = vmatprep.mubr.msk.f32.mxu0 %vm412_vm1, %v945_v60 }
 0x479   : > { %1991 = vmatmul.mubr.msk.f32.gmra.mrb[20].mxu0 %vm412_vm1, %v946_v63 }
 0x47a   : > { %1993 = vmatprep.mubr.msk.f32.mxu0 %vm412_vm1, %v947_v2 }
 0x47d   : > { %1994 = vmatmul.mubr.msk.f32.gmra.mrb[22].mxu0 %vm412_vm1, %v948_v9 }
 0x47e   : > { %1996 = vmatprep.mubr.msk.f32.mxu0 %vm412_vm1, %v949_v17 }
 0x481   : > { %1997 = vmatmul.mubr.msk.f32.gmra.mrb[24].mxu0 %vm412_vm1, %v950_v14 }
 0x482   : > { %1999 = vmatprep.mubr.msk.f32.mxu0 %vm412_vm1, %v951_v18 }
 0x485   : > { %2000 = vmatmul.mubr.msk.f32.gmra.mrb[26].mxu0 %vm412_vm1, %v952_v15 }
 0x486   : > { %2002 = vmatprep.mubr.msk.f32.mxu0 %vm412_vm1, %v953_v21 }
 0x489   : > { %2003 = vmatmul.mubr.msk.f32.gmra.mrb[28].mxu0 %vm412_vm1, %v954_v22 }
 0x533   : > { %v817_v23 = vpop.f32.mrb[16].mxu1 }
 0x534   : > { %v818_v24 = vadd.f32 1e-09, %v817_v23  ;;  %v1940_v25 = vpop.f32.mrb[17].mxu1 }
 0x536   : > { %2299 = vrcp.f32 %v818_v24 }
 0x538   : > { %v1975_v26 = vpop.f32.mrb[10].mxu0 }
 0x539   : > { %v896_v27 = vpop.f32.mrb[11].mxu0 }
 0x53c   : > { %v1978_v28 = vpop.f32.mrb[12].mxu0 }
 0x53d   : > { %v906_v29 = vpop.f32.mrb[13].mxu0 }
 0x540   : > { %v2300_v30 = vpop.eup %2299  ;;  %v1983_v31 = vpop.f32.mrb[14].mxu0 }
 0x541   : > { %v918_v32 = vrot.slane %v2300_v30, %v2749_v1  ;;  %1150 = vmax.xlane.f32.xlu1 %v1983_v31  ;;  %v1069_v33 = vpop.f32.mrb[15].mxu0 }
 0x542   : > { %1148 = vmax.xlane.f32.xlu0 %v1069_v33 }
 0x543   : > { %v920_v34 = vmul.f32 %v1975_v26, %v918_v32  ;;  %v919_v35 = vmul.f32 %v918_v32, %v896_v27  ;;  %v922_v36 = vmul.f32 %v1978_v28, %v918_v32  ;;  %v921_v37 = vmul.f32 %v918_v32, %v906_v29 }
 0x544   : > { %v1986_v38 = vpop.f32.mrb[16].mxu0 }
 0x545   : > { %v1467_v40 = vsub.f32 %v2602_v5, %v920_v34  ;;  %v1465_v41 = vsub.f32 %v2599_v3, %v919_v35  ;;  %v1471_v42 = vsub.f32 %v2612_v11, %v922_v36  ;;  %v1469_v44 = vsub.f32 %v2609_v10, %v921_v37  ;;  %1154 = vmax.xlane.f32.xlu1 %v1986_v38  ;;  %v1079_v46 = vpop.f32.mrb[17].mxu0 }
 0x547   : > { %v2777_v47 = vpack.c.bf16 %v1467_v40, %v1465_v41  ;;  %v2779_v55 = vpack.c.bf16 %v1471_v42, %v1469_v44 }
 0x548   : > { %v1989_v56 = vpop.f32.mrb[18].mxu0 }
 0x549   : > { %1152 = vmax.xlane.f32.xlu1 %v1079_v46  ;;  %v1089_v48 = vpop.f32.mrb[19].mxu0 }
 0x54c   : > { %v2781_v57 = vpop.f32.mrb[20].mxu0 }
 0x54d   : > { %1156 = vmax.xlane.f32.xlu1 %v1089_v48  ;;  %v1099_v58 = vpop.f32.mrb[21].mxu0 }
 0x54e   : > { %1160 = vmax.xlane.f32.xlu0 %v1099_v58 }
 0x550   : > { %v2783_v5 = vpop.f32.mrb[22].mxu0 }
 0x551   : > { %1158 = vmax.xlane.f32.xlu1 %v1989_v56  ;;  %v1109_v3 = vpop.f32.mrb[23].mxu0 }
 0x552   : > { %1164 = vmax.xlane.f32.xlu0 %v1109_v3 }
 0x554   : > { %v2785_v10 = vpop.f32.mrb[24].mxu0 }
 0x555   : > { %1162 = vmax.xlane.f32.xlu1 %v2781_v57  ;;  %v1119_v11 = vpop.f32.mrb[25].mxu0 }
 0x556   : > { %1168 = vmax.xlane.f32.xlu0 %v1119_v11 }
 0x558   : > { %v2788_v59 = vpop.f32.mrb[26].mxu0 }
 0x559   : > { %1166 = vmax.xlane.f32.xlu1 %v2783_v5  ;;  %v2791_v49 = vpop.f32.mrb[27].mxu0 }
 0x55a   : > { %1172 = vmax.xlane.f32.xlu0 %v2791_v49 }
 0x55c   : > { %v2794_v60 = vpop.f32.mrb[28].mxu0 }
 0x55d   : > { %1170 = vmax.xlane.f32.xlu1 %v2785_v10  ;;  %v2797_v61 = vpop.f32.mrb[29].mxu0 }
 0x55e   : > { %1176 = vmax.xlane.f32.xlu0 %v2797_v61 }
 0x561   : > { %1174 = vmax.xlane.f32.xlu1 %v2788_v59 }
 0x565   : > { %1178 = vmax.xlane.f32.xlu1 %v2794_v60 }
 0x5ce   : > { %v1151_v62 = vpop.xlane.xlu1 %1150 }
 0x5cf   : > { %v1181_v63 = vsub.f32 %v1983_v31, %v1151_v62  ;;  %v1149_v50 = vpop.xlane.xlu0 %1148 }
 0x5d0   : > { %v1180_v2 = vsub.f32 %v1069_v33, %v1149_v50 }
 0x5d1   : > { %v1198_v4 = vmul.f32 1.442695, %v1181_v63 }
 0x5d2   : > { %v1196_v51 = vmul.f32 1.442695, %v1180_v2  ;;  %v1155_v6 = vpop.xlane.xlu1 %1154 }
 0x5d3   : > { %2301 = vpow2.f32 %v1198_v4  ;;  %v1183_v52 = vsub.f32 %v1986_v38, %v1155_v6 }
 0x5d4   : > { %2303 = vpow2.f32 %v1196_v51 }
 0x5d5   : > { %v1202_v7 = vmul.f32 1.442695, %v1183_v52 }
 0x5d6   : > { %v1153_v9 = vpop.xlane.xlu1 %1152 }
 0x5d7   : > { %2305 = vpow2.f32 %v1202_v7  ;;  %v1182_v12 = vsub.f32 %v1079_v46, %v1153_v9 }
 0x5d9   : > { %v1200_v16 = vmul.f32 1.442695, %v1182_v12 }
 0x5da   : > { %v1157_v17 = vpop.xlane.xlu1 %1156 }
 0x5db   : > { %2307 = vpow2.f32 %v1200_v16  ;;  %v1184_v14 = vsub.f32 %v1089_v48, %v1157_v17  ;;  %v1161_v18 = vpop.xlane.xlu0 %1160 }
 0x5dc   : > { %v1186_v15 = vsub.f32 %v1099_v58, %v1161_v18 }
 0x5dd   : > { %v2302_v21 = vpop.eup %2301  ;;  %v1204_v22 = vmul.f32 1.442695, %v1184_v14 }
 0x5de   : > { %v2304_v23 = vpop.eup %2303  ;;  %v1208_v24 = vmul.f32 1.442695, %v1186_v15  ;;  %v1159_v25 = vpop.xlane.xlu1 %1158  ;;  %1230 = vadd.xlane.f32.xlu1 %v2302_v21 }
 0x5df   : > { %2309 = vpow2.f32 %v1204_v22  ;;  %v1185_v26 = vsub.f32 %v1989_v56, %v1159_v25  ;;  %v1165_v27 = vpop.xlane.xlu0 %1164  ;;  %1228 = vadd.xlane.f32.xlu0 %v2304_v23  ;;  %v2143_v28 = vpack.c.bf16 %v2302_v21, %v2304_v23 }
 0x5e0   : > { %v1188_v29 = vsub.f32 %v1109_v3, %v1165_v27  ;;  %2311 = vpow2.f32 %v1208_v24 }
 0x5e1   : > { %v2306_v30 = vpop.eup %2305  ;;  %v1206_v31 = vmul.f32 1.442695, %v1185_v26  ;;  %2144 = vmatpush3.bf16.msra.mxu1 %v2143_v28  ;;  %2167 = vmatprep.subr.bf16.mxu0 %v2143_v28 }
 0x5e2   : > { %v1212_v32 = vmul.f32 1.442695, %v1188_v29  ;;  %2169 = vmatpush3.bf16.msra.mxu0 %v2143_v28  ;;  %v1163_v33 = vpop.xlane.xlu1 %1162  ;;  %1234 = vadd.xlane.f32.xlu1 %v2306_v30 }
 0x5e3   : > { %2313 = vpow2.f32 %v1206_v31  ;;  %v1187_v34 = vsub.f32 %v2781_v57, %v1163_v33  ;;  %v1169_v35 = vpop.xlane.xlu0 %1168  ;;  %2145 = vmatprep.subr.bf16.mxu1 %v2447_v45 }
 0x5e4   : > { %v1190_v36 = vsub.f32 %v1119_v11, %v1169_v35  ;;  %2315 = vpow2.f32 %v1212_v32 }
 0x5e5   : > { %v2308_v37 = vpop.eup %2307  ;;  %v1210_v38 = vmul.f32 1.442695, %v1187_v34 }
 0x5e6   : > { %v1216_v40 = vmul.f32 1.442695, %v1190_v36  ;;  %v1167_v41 = vpop.xlane.xlu1 %1166  ;;  %1232 = vadd.xlane.f32.xlu0 %v2308_v37  ;;  %v2146_v42 = vpack.c.bf16 %v2306_v30, %v2308_v37 }
 0x5e7   : > { %2317 = vpow2.f32 %v1210_v38  ;;  %v1189_v44 = vsub.f32 %v2783_v5, %v1167_v41  ;;  %v1173_v46 = vpop.xlane.xlu0 %1172 }
 0x5e8   : > { %v1192_v56 = vsub.f32 %v2791_v49, %v1173_v46  ;;  %2147 = vmatpush3.bf16.msra.mxu1 %v2146_v42  ;;  %2171 = vmatprep.subr.bf16.mxu0 %v2146_v42  ;;  %2319 = vpow2.f32 %v1216_v40 }
 0x5e9   : > { %v2310_v48 = vpop.eup %2309  ;;  %v1214_v57 = vmul.f32 1.442695, %v1189_v44  ;;  %2173 = vmatpush3.bf16.msra.mxu0 %v2146_v42  ;;  %2148 = vmatprep.subr.bf16.mxu1 %v2447_v45 }
 0x5ea   : > { %v1220_v58 = vmul.f32 1.442695, %v1192_v56  ;;  %v1171_v3 = vpop.xlane.xlu1 %1170  ;;  %1236 = vadd.xlane.f32.xlu0 %v2310_v48  ;;  %v2312_v63 = vpop.eup %2311 }
 0x5eb   : > { %2321 = vpow2.f32 %v1214_v57  ;;  %v1191_v11 = vsub.f32 %v2785_v10, %v1171_v3  ;;  %v1177_v62 = vpop.xlane.xlu0 %1176  ;;  %v2450_v3 = vmov 1  }
 0x5ec   : > { %v1194_v5 = vsub.f32 %v2797_v61, %v1177_v62  ;;  %2323 = vpow2.f32 %v1220_v58  ;;  %2263 = vset.pattern.permute.xlu1 %v2450_v3 }
 0x5ed   : > { %v2314_v50 = vpop.eup %2313  ;;  %v1218_v49 = vmul.f32 1.442695, %v1191_v11 }
 0x5ee   : > { %v1224_v2 = vmul.f32 1.442695, %v1194_v5  ;;  %v1175_v4 = vpop.xlane.xlu1 %1174  ;;  %1238 = vadd.xlane.f32.xlu1 %v2314_v50  ;;  %1240 = vadd.xlane.f32.xlu0 %v2312_v63  ;;  %v2149_v51 = vpack.c.bf16 %v2314_v50, %v2310_v48  ;;  %v2316_v52 = vpop.eup %2315 }
 0x5ef   : > { %2325 = vpow2.f32 %v1218_v49  ;;  %v1193_v6 = vsub.f32 %v2788_v59, %v1175_v4  ;;  %v2338_v4 = vld [vmem:[%s2589_s22 + $0x20] sm:$0xff] }
 0x5f0   : > { %2150 = vmatpush3.bf16.msra.mxu1 %v2149_v51  ;;  %2175 = vmatprep.subr.bf16.mxu0 %v2149_v51  ;;  %2327 = vpow2.f32 %v1224_v2  ;;  %v2337_v2 = vld [vmem:[%s2589_s22 + $0x28] sm:$0xff] }
 0x5f1   : > { %v2318_v7 = vpop.eup %2317  ;;  %v1222_v10 = vmul.f32 1.442695, %v1193_v6  ;;  %2177 = vmatpush3.bf16.msra.mxu0 %v2149_v51  ;;  %2151 = vmatprep.subr.bf16.mxu1 %v2447_v45  ;;  %v2830_v6 = vld [vmem:[%s2589_s22 + $0x38] sm:$0xff] }
 0x5f2   : > { %1242 = vadd.xlane.f32.xlu1 %v2318_v7  ;;  %v1179_v61 = vpop.xlane.xlu1 %1178  ;;  %1244 = vadd.xlane.f32.xlu0 %v2316_v52  ;;  %v2152_v9 = vpack.c.bf16 %v2318_v7, %v2312_v63  ;;  %v2320_v16 = vpop.eup %2319  ;;  %v2340_v7 = vld [vmem:[%s2589_s22 + $0x30] sm:$0xff] }
 0x5f3   : > { %2329 = vpow2.f32 %v1222_v10  ;;  %v1195_v12 = vsub.f32 %v2794_v60, %v1179_v61 }
 0x5f4   : > { %2153 = vmatpush3.bf16.msra.mxu1 %v2152_v9  ;;  %2179 = vmatprep.subr.bf16.mxu0 %v2152_v9 }
 0x5f5   : > { %v2322_v59 = vpop.eup %2321  ;;  %v1226_v17 = vmul.f32 1.442695, %v1195_v12  ;;  %2181 = vmatpush3.bf16.msra.mxu0 %v2152_v9  ;;  %2154 = vmatprep.subr.bf16.mxu1 %v2447_v45  ;;  %v234_v12 = vld [vmem:[%s2925_s2 + $0x8] sm:$0xff] }
 0x5f6   : > { %1246 = vadd.xlane.f32.xlu1 %v2322_v59  ;;  %1248 = vadd.xlane.f32.xlu0 %v2320_v16  ;;  %v2155_v14 = vpack.c.bf16 %v2322_v59, %v2316_v52  ;;  %v2324_v18 = vpop.eup %2323 }
 0x5f7   : > { %2331 = vpow2.f32 %v1226_v17 }
 0x5f8   : > { %2156 = vmatpush3.bf16.msra.mxu1 %v2155_v14  ;;  %2183 = vmatprep.subr.bf16.mxu0 %v2155_v14 }
 0x5f9   : > { %v2326_v15 = vpop.eup %2325  ;;  %2185 = vmatpush3.bf16.msra.mxu0 %v2155_v14  ;;  %2157 = vmatprep.subr.bf16.mxu1 %v2447_v45 }
 0x5fa   : > { %1250 = vadd.xlane.f32.xlu1 %v2326_v15  ;;  %1252 = vadd.xlane.f32.xlu0 %v2324_v18  ;;  %v2158_v60 = vpack.c.bf16 %v2326_v15, %v2320_v16  ;;  %v2328_v21 = vpop.eup %2327 }
 0x5fc   : > { %2159 = vmatpush3.bf16.msra.mxu1 %v2158_v60  ;;  %2187 = vmatprep.subr.bf16.mxu0 %v2158_v60 }
 0x5fd   : > { %v2330_v22 = vpop.eup %2329  ;;  %2189 = vmatpush3.bf16.msra.mxu0 %v2158_v60  ;;  %2160 = vmatprep.subr.bf16.mxu1 %v2447_v45 }
 0x5fe   : > { %1254 = vadd.xlane.f32.xlu1 %v2330_v22  ;;  %1256 = vadd.xlane.f32.xlu0 %v2328_v21  ;;  %v2161_v23 = vpack.c.bf16 %v2330_v22, %v2324_v18 }
 0x600   : > { %2162 = vmatpush3.bf16.msra.mxu1 %v2161_v23  ;;  %2191 = vmatprep.subr.bf16.mxu0 %v2161_v23 }
 0x601   : > { %v2332_v24 = vpop.eup %2331  ;;  %2193 = vmatpush3.bf16.msra.mxu0 %v2161_v23  ;;  %2163 = vmatprep.subr.bf16.mxu1 %v2447_v45  ;;  %v2341_v23 = vld [vmem:[%s2589_s22] sm:$0xff] }
 0x602   : > { %1258 = vadd.xlane.f32.xlu1 %v2332_v24  ;;  %v2164_v25 = vpack.c.bf16 %v2332_v24, %v2328_v21 }
 0x604   : > { %2165 = vmatpush3.bf16.msra.mxu1 %v2164_v25  ;;  %2195 = vmatprep.subr.bf16.mxu0 %v2164_v25 }
 0x605   : > { %2197 = vmatpush3.bf16.msra.mxu0 %v2164_v25 }
 0x613   : > { %1474 = vperm.xlu1 %2263, %v2715_v8  }
 0x617   : > { %1478 = vperm.xlu1 %2263, %v2734_v20  }
 0x61b   : > { %1482 = vperm.xlu1 %2263, %v2721_v13  }
 0x61f   : > { %1486 = vperm.xlu1 %2263, %v2729_v19  }
 0x66b   : > { %v1231_v27 = vpop.xlane.xlu1 %1230 }
 0x66c   : > { %v1229_v26 = vpop.xlane.xlu0 %1228 }
 0x66d   : > { %1260 = vxpose.xlu0.b32.start [1/16] (narrow) %v1229_v26, 8 }
 0x66f   : > { %v1235_v29 = vpop.xlane.xlu1 %1234 }
 0x671   : > { %1261 = vxpose.xlu0.b32.cont [2/16] (narrow) %v1231_v27, 8 }
 0x673   : > { %v1233_v28 = vpop.xlane.xlu0 %1232 }
 0x675   : > { %1262 = vxpose.xlu0.b32.cont [3/16] (narrow) %v1233_v28, 8 }
 0x677   : > { %v1237_v30 = vpop.xlane.xlu0 %1236 }
 0x679   : > { %1263 = vxpose.xlu0.b32.cont [4/16] (narrow) %v1235_v29, 8 }
 0x67b   : > { %v1239_v31 = vpop.xlane.xlu1 %1238  ;;  %v1241_v32 = vpop.xlane.xlu0 %1240 }
 0x67d   : > { %1264 = vxpose.xlu0.b32.cont [5/16] (narrow) %v1237_v30, 8 }
 0x67f   : > { %v1243_v45 = vpop.xlane.xlu1 %1242  ;;  %v1245_v33 = vpop.xlane.xlu0 %1244 }
 0x681   : > { %1265 = vxpose.xlu0.b32.cont [6/16] (narrow) %v1239_v31, 8 }
 0x683   : > { %v1247_v34 = vpop.xlane.xlu1 %1246  ;;  %v1249_v35 = vpop.xlane.xlu0 %1248 }
 0x685   : > { %1266 = vxpose.xlu0.b32.cont [7/16] (narrow) %v1241_v32, 8  ;;  %v2342_v32 = vld [vmem:[%s2589_s22 + $0x8] sm:$0xff] }
 0x687   : > { %v1251_v36 = vpop.xlane.xlu1 %1250  ;;  %v1253_v37 = vpop.xlane.xlu0 %1252 }
 0x689   : > { %1267 = vxpose.xlu0.b32.cont [8/16] (narrow) %v1243_v45, 8 }
 0x68b   : > { %v1255_v38 = vpop.xlane.xlu1 %1254  ;;  %v1257_v40 = vpop.xlane.xlu0 %1256 }
 0x68d   : > { %1268 = vxpose.xlu0.b32.cont [9/16] (narrow) %v1245_v33, 8 }
 0x68f   : > { %v1259_v41 = vpop.xlane.xlu1 %1258 }
 0x691   : > { %1269 = vxpose.xlu0.b32.cont [10/16] (narrow) %v1247_v34, 8 }
 0x693   : > { %v1475_v16 = vpop.permute.xlu1 %1474 }
 0x695   : > { %1270 = vxpose.xlu0.b32.cont [11/16] (narrow) %v1249_v35, 8 }
 0x697   : > { %v1479_v59 = vpop.permute.xlu1 %1478 }
 0x699   : > { %1271 = vxpose.xlu0.b32.cont [12/16] (narrow) %v1251_v36, 8 }
 0x69b   : > { %v1483_v26 = vpop.permute.xlu1 %1482 }
 0x69d   : > { %1272 = vxpose.xlu0.b32.cont [13/16] (narrow) %v1253_v37, 8 }
 0x6a1   : > { %1273 = vxpose.xlu0.b32.cont [14/16] (narrow) %v1255_v38, 8  ;;  %v1487_v38 = vpop.permute.xlu1 %1486 }
 0x6a5   : > { %1274 = vxpose.xlu0.b32.cont [15/16] (narrow) %v1257_v40, 8 }
 0x6a9   : > { %1275 = vxpose.xlu0.b32.end [16/16] (narrow) %v1259_v41, 8 }
 0x6d2   : > { %2264 = vset.pattern.permute.xlu0 %v2450_v3 }
 0x6ed   : > { %v1276_v42 = vpop.trf.xlu0 }
 0x6ee   : > { %2333 = vrcp.f32 %v1276_v42  ;;  %v2343_v42 = vld [vmem:[%s2589_s22 + $0x10] sm:$0xff] }
 0x6f8   : > { %v2334_v44 = vpop.eup %2333 }
 0x6f9   : > { %v1367_v46 = vrot.slane %v2334_v44, %v2749_v1  ;;  %2038 = vmatmul.mubr.f32.vlgmr.msra.gmra.mrb[18].mxu1 %v2334_v44 }
 0x6fa   : > { %1565 = vmatprep.mubr.f32.mxu1 %v2446_v0 }
 0x6fb   : > { %v1368_v56 = vmul.f32 %v1367_v46, %v2739_v39  ;;  %v1369_v48 = vmul.f32 %v1367_v46, %v2745_v54  ;;  %v1370_v57 = vmul.f32 %v1367_v46, %v2741_v43  ;;  %v1371_v58 = vmul.f32 %v1367_v46, %v2743_v53 }
 0x6fd   : > { %2072 = vmatprep.mubr.f32.mxu0 %v1368_v56 }
 0x6fe   : > { %2073 = vmatmul.mubr.f32.vlgmr.msra.gmra.mrb[30].mxu0 %v1369_v48 }
 0x6ff   : > { %2075 = vmatprep.mubr.f32.mxu0 %v1370_v57 }
 0x702   : > { %2076 = vmatmul.mubr.f32.gmra.mrb[32].mxu0 %v1371_v58 }
 0x7cc   : > { %v1359_v39 = vpop.f32.mrb[18].mxu1 }
 0x7cd   : > { %v1360_v43 = vadd.f32 1e-09, %v1359_v39  ;;  %v2039_v54 = vpop.f32.mrb[19].mxu1  ;;  %v2344_v39 = vld [vmem:[%s2589_s22 + $0x18] sm:$0xff]  ;;  %s2381_s22 = scalar_lea.vmem %s2380_s23, 2048 }
 0x7ce   : > { %p2383_p10 = scmp.lt.s32.totalorder %s2381_s22, %s2375_s11 }
 0x7cf   : > { %2335 = vrcp.f32 %v1360_v43 }
 0x7d0   : > { %p2384_p0 = por %p2383_p10, %p2382_p8 }
 0x7d1   : > { %v2074_v53 = vpop.f32.mrb[30].mxu0 }
 0x7d2   : > { %v1438_v11 = vpop.f32.mrb[31].mxu0  ;;  %p2385_p2 = pnand %p2384_p0, %p2378_p13 }
 0x7d5   : > { %v2077_v62 = vpop.f32.mrb[32].mxu0 }
 0x7d6   : > { %v1448_v63 = vpop.f32.mrb[33].mxu0 }
 0x7d9   : > { %v2336_v5 = vpop.eup %2335 }
 0x7da   : > { %v1460_v8 = vrot.slane %v2336_v5, %v2749_v1  ;;  %v233_v1 = vld [vmem:[%s2925_s2] sm:$0xff] }
 0x7dc   : > { %v1462_v20 = vmul.f32 %v2074_v53, %v1460_v8  ;;  %v1461_v50 = vmul.f32 %v1460_v8, %v1438_v11  ;;  %v1464_v13 = vmul.f32 %v2077_v62, %v1460_v8  ;;  %v1463_v49 = vmul.f32 %v1460_v8, %v1448_v63 }
 0x7de   : > { %v1468_v19 = vsub.f32 %v2337_v2, %v1462_v20  ;;  %v1466_v51 = vsub.f32 %v2338_v4, %v1461_v50  ;;  %v1472_v52 = vsub.f32 %v2830_v6, %v1464_v13  ;;  %v1470_v10 = vsub.f32 %v2340_v7, %v1463_v49 }
 0x7e0   : > { %v2198_v61 = vpack.c.bf16 %v1468_v19, %v1466_v51  ;;  %v2202_v9 = vpack.c.bf16 %v1472_v52, %v1470_v10 }
 0x7e2   : > { %2199 = vmatprep.subr.bf16.mxu1 %v2198_v61 }
 0x7e3   : > { %2201 = vmatpush1.bf16.msra.mxu1 %v2777_v47  ;;  %v235_v47 = vld [vmem:[%s2925_s2 + $0x10] sm:$0xff] }
 0x7e4   : > { %2203 = vmatprep.subr.bf16.mxu1 %v2202_v9 }
 0x7e7   : > { %2205 = vmatpush1.bf16.msra.mxu1 %v2779_v55  ;;  %v236_v55 = vld [vmem:[%s2925_s2 + $0x18] sm:$0xff] }
 0x7ea   : > { %1754 = vmatmul.mubr.msk.f32.vlgmr.msra.gmra.mrb[20].mxu1 %vm241_vm0, %v233_v1 }
 0x7eb   : > { %1571 = vmatprep.mubr.f32.mxu1 %v2446_v0 }
 0x7ee   : > { %1755 = vmatmul.mubr.msk.f32.gmra.mrb[22].mxu1 %vm241_vm0, %v234_v12 }
 0x7ef   : > { %1577 = vmatprep.mubr.f32.mxu1 %v2446_v0 }
 0x7f2   : > { %1756 = vmatmul.mubr.msk.f32.gmra.mrb[24].mxu1 %vm241_vm0, %v235_v47 }
 0x7f3   : > { %1583 = vmatprep.mubr.f32.mxu1 %v2446_v0 }
 0x7f6   : > { %1757 = vmatmul.mubr.msk.f32.gmra.mrb[26].mxu1 %vm241_vm0, %v236_v55 }
 0x8bd   : > { %v1567_v17 = vpop.f32.mrb[20].mxu1 }
 0x8be   : > { %v1568_v14 = vadd.f32 %v1567_v17, %v1475_v16  ;;  %v1569_v18 = vpop.f32.mrb[21].mxu1 }
 0x8bf   : > { %v1570_v15 = vadd.f32 %v1569_v18, %v1475_v16 }
 0x8c0   : > { %v1590_v60 = vmax.f32 %v1568_v14, 0.0 }
 0x8c1   : > { %v1591_v21 = vmax.f32 %v1570_v15, 0.0  ;;  %v1573_v22 = vpop.f32.mrb[22].mxu1 }
 0x8c2   : > { %v1598_v24 = vadd.f32 %v2341_v23, %v1590_v60  ;;  %v1574_v0 = vadd.f32 %v1573_v22, %v1479_v59  ;;  %v1575_v25 = vpop.f32.mrb[23].mxu1 }
 0x8c3   : > { %v1599_v27 = vadd.f32 %v2338_v4, %v1591_v21  ;;  %v1576_v28 = vadd.f32 %v1575_v25, %v1479_v59 }
 0x8c4   : > { %1606 = vst [vmem:[%s2858_s9] sm:$0xff] %v1598_v24  ;;  %v1592_v29 = vmax.f32 %v1574_v0, 0.0 }
 0x8c5   : > { %1758 = vst [vmem:[%s2858_s9 + $0x20] sm:$0xff] %v1599_v27  ;;  %v1593_v30 = vmax.f32 %v1576_v28, 0.0  ;;  %v1579_v31 = vpop.f32.mrb[24].mxu1 }
 0x8c6   : > { %v1600_v45 = vadd.f32 %v2342_v32, %v1592_v29  ;;  %v1580_v33 = vadd.f32 %v1579_v31, %v1483_v26  ;;  %v1581_v34 = vpop.f32.mrb[25].mxu1 }
 0x8c7   : > { %v1601_v35 = vadd.f32 %v2337_v2, %v1593_v30  ;;  %v1582_v36 = vadd.f32 %v1581_v34, %v1483_v26 }
 0x8c8   : > { %1607 = vst [vmem:[%s2858_s9 + $0x8] sm:$0xff] %v1600_v45  ;;  %v1594_v37 = vmax.f32 %v1580_v33, 0.0 }
 0x8c9   : > { %1759 = vst [vmem:[%s2858_s9 + $0x28] sm:$0xff] %v1601_v35  ;;  %v1595_v40 = vmax.f32 %v1582_v36, 0.0  ;;  %v1585_v41 = vpop.f32.mrb[26].mxu1 }
 0x8ca   : > { %v1602_v44 = vadd.f32 %v2343_v42, %v1594_v37  ;;  %v1586_v46 = vadd.f32 %v1585_v41, %v1487_v38  ;;  %v1587_v56 = vpop.f32.mrb[27].mxu1 }
 0x8cb   : > { %v1603_v48 = vadd.f32 %v2340_v7, %v1595_v40  ;;  %v1588_v57 = vadd.f32 %v1587_v56, %v1487_v38 }
 0x8cc   : > { %1608 = vst [vmem:[%s2858_s9 + $0x10] sm:$0xff] %v1602_v44  ;;  %v1596_v58 = vmax.f32 %v1586_v46, 0.0 }
 0x8cd   : > { %1760 = vst [vmem:[%s2858_s9 + $0x30] sm:$0xff] %v1603_v48  ;;  %v1597_v3 = vmax.f32 %v1588_v57, 0.0 }
 0x8ce   : > { %v1604_v43 = vadd.f32 %v2344_v39, %v1596_v58 }
 0x8cf   : > { %v1605_v54 = vadd.f32 %v2830_v6, %v1597_v3 }
 0x8d0   : > { %1609 = vst [vmem:[%s2858_s9 + $0x18] sm:$0xff] %v1604_v43 }
 0x8d1   : > { %1761 = vst [vmem:[%s2858_s9 + $0x38] sm:$0xff] %v1605_v54 }
 0x8d2   : > { %2388 = shalt.err (!%p2385_p2)
}
 0x8d3   : > { %s2389_s25 = scalar_lea.hbm %s2876_s10, 1024  ;;  %s2393_s5 = scalar_lea.hbm %s2927_s4, 2048 }
 0x8d4   : > { %p2390_p4 = scmp.ne.s32.totalorder %s2876_s10, %s2389_s25  ;;  %p2394_p9 = scmp.lt.u32.totalorder %s2876_s10, %s2927_s4 }
 0x8d5   : > { %p2395_p1 = scmp.lt.u32.totalorder %s2393_s5, %s2389_s25  ;;  %p2397_p6 = scmp.lt.u32.totalorder %s2389_s25, %s2876_s10 }
 0x8d6   : > { %p2391_p5 = pnand %p2390_p4, %p2934_p11 }
 0x8d7   : > { %p2396_p3 = por %p2395_p1, %p2394_p9 }
 0x8d8   : > { %p2392_p7 = pneg %p2391_p5 }
 0x8d9   : > { %p2398_p12 = por %p2397_p6, %p2396_p3 }
 0x8db   : > { %p2399_p13 = pnand %p2398_p12, %p2392_p7 }
 0x8dd   : > { %2402 = shalt.err (!%p2399_p13)
}
 0x8de   : > { %s2452_s9 = smov 128   ;;  %s2453_s20 = smov 8  }
 0x8df   : > { %2208 = dma.vmem_to_hbm [thread:$0]  (%p2934_p11), %s2869_s14, 1024, %s2876_s10, %s1616_s19, %s2452_s9, %s2452_s9, %s2453_s20  }
 0x8e0 PF: > { %s1645_s26 = sand.u32 1, %s2429_s15   ;;  %p2935_p8 = scmp.ne.s32.totalorder %s2932_s28, 0 }
 0x8e1   : > { %p2936_p10 = scmp.ge.s32.totalorder %s2441_s18, 2  ;;  %s1646_s8 = scalar_lea.sflag [#allocation4], %s1645_s26 }
 0x8e3   : > { %p2215_p0 = pnand %p2936_p10, %p2935_p8 }
 0x8e5   : > { %2424 = dma.done.wait (!%p2215_p0), %s1646_s8, 1024  }
 0x8e6   : > { %2426 = vsyncadd (!%p2215_p0), %s1646_s8, 4294966272  ;;  %p17_p2 = scmp.ge.s32.totalorder %s2504_s21, 4   ;;  %s2937_s15 = smov %s2433_s16 }
 0x8e7   : > { %s2938_s16 = smov %s2437_s17  ;;  %s2939_s17 = smov %s2516_s24 }
 0x8e8   : > { %s2940_s18 = smov %s2504_s21  ;;  %19 = sbr.rel (!%p17_p2) target bundleno = 5 (0x5), region = 83 }
 0x8ef   :  { %1651 = vsyncpa [#allocation3], 1 }
 0x8f0   :  { %1653 = vsyncpa [#allocation3 + $0x1], 1 }
 0x8f1   :  { %1654 = vsyncpa [#allocation4], 1 }
 0x8f2   :  { %1656 = vsyncpa [#allocation4 + $0x1], 1 }

</bundles_post_ra>
